<compile_context>
chip_gen: v7x
topology: tpu7x:2x2x1
jax: 0.10.0
libtpu: 0.0.40
codegen_flags: <defaults>
</compile_context>

<pallas_src>
import jax
import jax.numpy as jnp
from jax.experimental import pallas as pl
from jax.experimental.pallas import tpu as pltpu

K_IN = 100   # fc input features
H = 64       # hidden width
N_OUT = 4    # fc3 output features


def mlp_kernel(x_ref, w1_ref, b1_ref, w2_ref, b2_ref, w3_ref, b3_ref, o_ref):
    # fc1: (TM,100) @ (100,64) + (1,64), relu  (Mosaic lane-pads K=100 in vregs)
    h1 = jnp.dot(x_ref[...], w1_ref[...], preferred_element_type=jnp.float32)
    h1 = jnp.maximum(h1 + b1_ref[...], 0.0)
    # fc2: (TM,64) @ (64,64) + (1,64), relu
    h2 = jnp.dot(h1, w2_ref[...], preferred_element_type=jnp.float32)
    h2 = jnp.maximum(h2 + b2_ref[...], 0.0)
    # fc3: (TM,64) @ (64,4) + (1,4)
    h3 = jnp.dot(h2, w3_ref[...], preferred_element_type=jnp.float32)
    o_ref[...] = (h3 + b3_ref[...]).astype(o_ref.dtype)


def testnet_forward(x, params, tm=1024):
    w1, b1, w2, b2, w3, b3 = params
    x2d = x.reshape(-1, K_IN).astype(jnp.float32)
    B = x2d.shape[0]

    # Batch tile: multiple of 8 sublanes, capped so the grid has >= 2 steps
    # when B is large enough (lets v7x shard the parallel batch axis over both
    # TensorCores).  No batch padding: the partial last tile is edge-masked.
    half_b_rounded = ((pl.cdiv(B, 2) + 7) // 8) * 8
    TM = max(8, min(tm, half_b_rounded))
    grid = (pl.cdiv(B, TM),)

    def resident_spec(shape):
        # full-array block, same block index every grid step -> stays in VMEM
        return pl.BlockSpec(shape, lambda i: (0, 0), memory_space=pltpu.VMEM)

    flops = 2 * B * (K_IN * H + H * H + H * N_OUT)
    bytes_accessed = (B * (K_IN + N_OUT) * 4
                      + (K_IN * H + H + H * H + H + H * N_OUT + N_OUT) * 4)

    out = pl.pallas_call(
        mlp_kernel,
        out_shape=jax.ShapeDtypeStruct((B, N_OUT), jnp.float32),
        grid=grid,
        in_specs=[
            pl.BlockSpec((TM, K_IN), lambda i: (i, 0), memory_space=pltpu.VMEM),
            resident_spec(w1.shape), resident_spec(b1.shape),
            resident_spec(w2.shape), resident_spec(b2.shape),
            resident_spec(w3.shape), resident_spec(b3.shape),
        ],
        out_specs=pl.BlockSpec((TM, N_OUT), lambda i: (i, 0),
                               memory_space=pltpu.VMEM),
        compiler_params=pltpu.CompilerParams(
            dimension_semantics=("parallel",),
            vmem_limit_bytes=32 << 20),
        cost_estimate=pl.CostEstimate(flops=flops,
                                      transcendentals=0,
                                      bytes_accessed=bytes_accessed),
    )(x2d, w1, b1, w2, b2, w3, b3)

    return out


def init_params(key):
    # PyTorch nn.Linear default init: U(-1/sqrt(fan_in), 1/sqrt(fan_in))
    def linear(key, fan_in, fan_out):
        kw, kb = jax.random.split(key)
        bound = 1.0 / (fan_in ** 0.5)
        w = jax.random.uniform(kw, (fan_in, fan_out), jnp.float32, -bound, bound)
        b = jax.random.uniform(kb, (1, fan_out), jnp.float32, -bound, bound)
        return w, b

    k1, k2, k3 = jax.random.split(key, 3)
    w1, b1 = linear(k1, K_IN, H)
    w2, b2 = linear(k2, H, H)
    w3, b3 = linear(k3, H, N_OUT)
    return (w1, b1, w2, b2, w3, b3)


if __name__ == "__main__":
    key = jax.random.PRNGKey(0)
    kx, kp = jax.random.split(key)
    # batch=2, size=10 -> x of shape (2, 10, 10), viewed as (2, 100)
    x = jax.random.normal(kx, (2, 10, 10), jnp.float32)
    params = init_params(kp)

    out = testnet_forward(x, params)
    jax.block_until_ready(out)

    # reference check in plain JAX (full-precision f32 matmuls)
    w1, b1, w2, b2, w3, b3 = params
    hi = jax.lax.Precision.HIGHEST
    xf = x.reshape(-1, K_IN)
    ref = jnp.maximum(jnp.dot(xf, w1, precision=hi) + b1, 0.0)
    ref = jnp.maximum(jnp.dot(ref, w2, precision=hi) + b2, 0.0)
    ref = jnp.dot(ref, w3, precision=hi) + b3
    assert out.shape == (2, 4)
    assert jnp.allclose(out, ref, atol=1e-5), "mismatch vs reference"
    print("KERNEL_OK")
</pallas_src>

<mosaic_0001>
module attributes {stable_mosaic.version = 11 : i64} {
  func.func @mlp_kernel(%arg0: i32, %arg1: memref<8x100xf32, #tpu.memory_space<vmem>>, %arg2: memref<100x64xf32, #tpu.memory_space<vmem>>, %arg3: memref<1x64xf32, #tpu.memory_space<vmem>>, %arg4: memref<64x64xf32, #tpu.memory_space<vmem>>, %arg5: memref<1x64xf32, #tpu.memory_space<vmem>>, %arg6: memref<64x4xf32, #tpu.memory_space<vmem>>, %arg7: memref<1x4xf32, #tpu.memory_space<vmem>>, %arg8: memref<8x4xf32, #tpu.memory_space<vmem>>) attributes {dimension_semantics = [#tpu.dimension_semantics<parallel>], iteration_bounds = array<i64: 1>, scalar_prefetch = 0 : i64, scratch_operands = 0 : i64, tpu.core_type = #tpu.core_type<tc>, window_params = [{transform_indices = @transform_0, window_bounds = array<i64: 8, 100>}, {pipeline_mode = #tpu.pipeline_mode<synchronous>, transform_indices = @transform_1, window_bounds = array<i64: 100, 64>}, {pipeline_mode = #tpu.pipeline_mode<synchronous>, transform_indices = @transform_2, window_bounds = array<i64: 1, 64>}, {pipeline_mode = #tpu.pipeline_mode<synchronous>, transform_indices = @transform_3, window_bounds = array<i64: 64, 64>}, {pipeline_mode = #tpu.pipeline_mode<synchronous>, transform_indices = @transform_4, window_bounds = array<i64: 1, 64>}, {pipeline_mode = #tpu.pipeline_mode<synchronous>, transform_indices = @transform_5, window_bounds = array<i64: 64, 4>}, {pipeline_mode = #tpu.pipeline_mode<synchronous>, transform_indices = @transform_6, window_bounds = array<i64: 1, 4>}, {transform_indices = @transform_7, window_bounds = array<i64: 8, 4>}]} {
    %c0 = arith.constant 0 : index
    %c0_0 = arith.constant 0 : index
    %0 = vector.load %arg1[%c0, %c0_0] : memref<8x100xf32, #tpu.memory_space<vmem>>, vector<8x100xf32>
    %c0_1 = arith.constant 0 : index
    %c0_2 = arith.constant 0 : index
    %1 = vector.load %arg2[%c0_1, %c0_2] : memref<100x64xf32, #tpu.memory_space<vmem>>, vector<100x64xf32>
    %cst = arith.constant dense<0.000000e+00> : vector<8x64xf32>
    %2 = tpu.matmul %0, %1, %cst {dimension_numbers = #tpu.dot_dimension_numbers<[1], [0], [0], [1], [0, 0, 1, 1], [], []>} : vector<8x100xf32>, vector<100x64xf32>, vector<8x64xf32> -> vector<8x64xf32>
    %c0_3 = arith.constant 0 : index
    %c0_4 = arith.constant 0 : index
    %3 = vector.load %arg3[%c0_3, %c0_4] : memref<1x64xf32, #tpu.memory_space<vmem>>, vector<1x64xf32>
    %4 = vector.broadcast %3 : vector<1x64xf32> to vector<8x64xf32>
    %5 = arith.addf %2, %4 : vector<8x64xf32>
    %cst_5 = arith.constant 0.000000e+00 : f32
    %6 = vector.broadcast %cst_5 : f32 to vector<8x64xf32>
    %7 = arith.maximumf %5, %6 : vector<8x64xf32>
    %c0_6 = arith.constant 0 : index
    %c0_7 = arith.constant 0 : index
    %8 = vector.load %arg4[%c0_6, %c0_7] : memref<64x64xf32, #tpu.memory_space<vmem>>, vector<64x64xf32>
    %cst_8 = arith.constant dense<0.000000e+00> : vector<8x64xf32>
    %9 = tpu.matmul %7, %8, %cst_8 {dimension_numbers = #tpu.dot_dimension_numbers<[1], [0], [0], [1], [0, 0, 1, 1], [], []>} : vector<8x64xf32>, vector<64x64xf32>, vector<8x64xf32> -> vector<8x64xf32>
    %c0_9 = arith.constant 0 : index
    %c0_10 = arith.constant 0 : index
    %10 = vector.load %arg5[%c0_9, %c0_10] : memref<1x64xf32, #tpu.memory_space<vmem>>, vector<1x64xf32>
    %11 = vector.broadcast %10 : vector<1x64xf32> to vector<8x64xf32>
    %12 = arith.addf %9, %11 : vector<8x64xf32>
    %cst_11 = arith.constant 0.000000e+00 : f32
    %13 = vector.broadcast %cst_11 : f32 to vector<8x64xf32>
    %14 = arith.maximumf %12, %13 : vector<8x64xf32>
    %c0_12 = arith.constant 0 : index
    %c0_13 = arith.constant 0 : index
    %15 = vector.load %arg6[%c0_12, %c0_13] : memref<64x4xf32, #tpu.memory_space<vmem>>, vector<64x4xf32>
    %cst_14 = arith.constant dense<0.000000e+00> : vector<8x4xf32>
    %16 = tpu.matmul %14, %15, %cst_14 {dimension_numbers = #tpu.dot_dimension_numbers<[1], [0], [0], [1], [0, 0, 1, 1], [], []>} : vector<8x64xf32>, vector<64x4xf32>, vector<8x4xf32> -> vector<8x4xf32>
    %c0_15 = arith.constant 0 : index
    %c0_16 = arith.constant 0 : index
    %17 = vector.load %arg7[%c0_15, %c0_16] : memref<1x4xf32, #tpu.memory_space<vmem>>, vector<1x4xf32>
    %18 = vector.broadcast %17 : vector<1x4xf32> to vector<8x4xf32>
    %19 = arith.addf %16, %18 : vector<8x4xf32>
    %c0_17 = arith.constant 0 : index
    %c0_18 = arith.constant 0 : index
    %20 = vector.load %arg8[%c0_17, %c0_18] : memref<8x4xf32, #tpu.memory_space<vmem>>, vector<8x4xf32>
    tpu.vector_store %arg8[%c0_17, %c0_18], %19 {strides = array<i32>} : memref<8x4xf32, #tpu.memory_space<vmem>>, vector<8x4xf32>,
    return
  }
  func.func @transform_0(%arg0: i32) -> (i32, i32) {
    %c0_i32 = arith.constant 0 : i32
    %c0_i32_0 = arith.constant 0 : i32
    return %arg0, %c0_i32 : i32, i32
  }
  func.func @transform_1(%arg0: i32) -> (i32, i32) {
    %c0_i32 = arith.constant 0 : i32
    %c0_i32_0 = arith.constant 0 : i32
    %c0_i32_1 = arith.constant 0 : i32
    return %c0_i32, %c0_i32_0 : i32, i32
  }
  func.func @transform_2(%arg0: i32) -> (i32, i32) {
    %c0_i32 = arith.constant 0 : i32
    %c0_i32_0 = arith.constant 0 : i32
    %c0_i32_1 = arith.constant 0 : i32
    return %c0_i32, %c0_i32_0 : i32, i32
  }
  func.func @transform_3(%arg0: i32) -> (i32, i32) {
    %c0_i32 = arith.constant 0 : i32
    %c0_i32_0 = arith.constant 0 : i32
    %c0_i32_1 = arith.constant 0 : i32
    return %c0_i32, %c0_i32_0 : i32, i32
  }
  func.func @transform_4(%arg0: i32) -> (i32, i32) {
    %c0_i32 = arith.constant 0 : i32
    %c0_i32_0 = arith.constant 0 : i32
    %c0_i32_1 = arith.constant 0 : i32
    return %c0_i32, %c0_i32_0 : i32, i32
  }
  func.func @transform_5(%arg0: i32) -> (i32, i32) {
    %c0_i32 = arith.constant 0 : i32
    %c0_i32_0 = arith.constant 0 : i32
    %c0_i32_1 = arith.constant 0 : i32
    return %c0_i32, %c0_i32_0 : i32, i32
  }
  func.func @transform_6(%arg0: i32) -> (i32, i32) {
    %c0_i32 = arith.constant 0 : i32
    %c0_i32_0 = arith.constant 0 : i32
    %c0_i32_1 = arith.constant 0 : i32
    return %c0_i32, %c0_i32_0 : i32, i32
  }
  func.func @transform_7(%arg0: i32) -> (i32, i32) {
    %c0_i32 = arith.constant 0 : i32
    %c0_i32_0 = arith.constant 0 : i32
    return %arg0, %c0_i32 : i32, i32
  }
}

</mosaic_0001>

<bundles_post_ra>
// kernel: tpu_custom_call.1
= control target key start
LH: loop header
LB: loop body
LE: loop exit
PB: predicated region body
PF: predicated region fallthrough
CT: control target
= control target key end

     0   :  { %12 = vsyncpa [#allocation3], 0  ;;  %v501_v2 = vmov 0.0|0.0   ;;  %vm502_vm0 = vmmov 0   ;;  %v503_v6 = vmov 0.0   ;;  %vm52_vm1 = vcmask 1043456   ;;  %s681_s0 = inlined_call_operand.vmem [shape: f32[2,100], index: 0, kind: input, shape index: {}]   ;;  %s682_s1 = inlined_call_operand.vmem [shape: f32[100,64], index: 1, kind: input, shape index: {}]   ;;  %s683_s2 = inlined_call_operand.vmem [shape: f32[1,64], index: 2, kind: input, shape index: {}]   ;;  %s684_s3 = inlined_call_operand.vmem [shape: f32[64,64], index: 3, kind: input, shape index: {}]   ;;  %s685_s4 = inlined_call_operand.vmem [shape: f32[1,64], index: 4, kind: input, shape index: {}]   ;;  %s686_s5 = inlined_call_operand.vmem [shape: f32[64,4], index: 5, kind: input, shape index: {}]   ;;  %s687_s6 = inlined_call_operand.vmem [shape: f32[1,4], index: 6, kind: input, shape index: {}]   ;;  %s688_s7 = inlined_call_operand.hbm [shape: f32[2,4], index: 7, kind: output, shape index: {}]  }
   0x1   :  { %v28_v0 = vld [vmem:[%s682_s1] sm:$0xff]  ;;  %v29_v1 = vld [vmem:[%s682_s1 + $0x8] sm:$0xff]  ;;  %429 = vmatprep.subr.bf16.mxu0 %v501_v2  ;;  %v30_v4 = vld [vmem:[%s682_s1 + $0x10] sm:$0xff]  ;;  %447 = vmatprep.subr.bf16.mxu1 %v501_v2  ;;  %vm48_vm2 = vcmask 818176   ;;  %vm142_vm3 = vcmask 523264   ;;  %vm305_vm4 = vcmask 31744  }
   0x2   :  { %v430_v3 = vpack.c.bf16 %v29_v1, %v28_v0  ;;  %v31_v5 = vld [vmem:[%s682_s1 + $0x18] sm:$0xff]  ;;  %388 = vmatprep.mubr.msk.f32.mxu0 %vm502_vm0, %v503_v6  ;;  %407 = vmatprep.mubr.msk.f32.mxu1 %vm502_vm0, %v503_v6  ;;  %v32_v8 = vld [vmem:[%s682_s1 + $0x20] sm:$0xff]  ;;  %v33_v9 = vld [vmem:[%s682_s1 + $0x28] sm:$0xff] }
   0x3   :  { %v433_v7 = vpack.c.bf16 %v31_v5, %v30_v4  ;;  %v127_v10 = vld [vmem:[%s684_s3] sm:$0xff]  ;;  %v128_v11 = vld [vmem:[%s684_s3 + $0x8] sm:$0xff]  ;;  %v129_v12 = vld [vmem:[%s684_s3 + $0x10] sm:$0xff]  ;;  %v436_v15 = vpack.c.bf16 %v33_v9, %v32_v8 }
   0x4   :  { %431 = vmatpush3.bf16.msra.mxu0 %v430_v3  ;;  %v448_v13 = vpack.c.bf16 %v128_v11, %v127_v10  ;;  %v130_v14 = vld [vmem:[%s684_s3 + $0x18] sm:$0xff]  ;;  %v34_v16 = vld [vmem:[%s682_s1 + $0x30] sm:$0xff]  ;;  %v131_v19 = vld [vmem:[%s684_s3 + $0x20] sm:$0xff] }
   0x5   :  { %432 = vmatprep.subr.bf16.mxu0 %v501_v2  ;;  %v35_v17 = vld [vmem:[%s682_s1 + $0x38] sm:$0xff]  ;;  %v451_v18 = vpack.c.bf16 %v130_v14, %v129_v12  ;;  %v132_v20 = vld [vmem:[%s684_s3 + $0x28] sm:$0xff]  ;;  %v36_v22 = vld [vmem:[%s682_s1 + $0x40] sm:$0xff] }
   0x6   :  { %449 = vmatpush3.bf16.msra.mxu1 %v448_v13  ;;  %v439_v21 = vpack.c.bf16 %v35_v17, %v34_v16  ;;  %v37_v23 = vld [vmem:[%s682_s1 + $0x48] sm:$0xff]  ;;  %v454_v24 = vpack.c.bf16 %v132_v20, %v131_v19  ;;  %v38_v26 = vld [vmem:[%s682_s1 + $0x50] sm:$0xff]  ;;  %v39_v27 = vld [vmem:[%s682_s1 + $0x58] sm:$0xff] }
   0x7   :  { %450 = vmatprep.subr.bf16.mxu1 %v501_v2  ;;  %v442_v25 = vpack.c.bf16 %v37_v23, %v36_v22  ;;  %v445_v28 = vpack.c.bf16 %v39_v27, %v38_v26  ;;  %v40_v29 = vld [vmem:[%s682_s1 + $0x60] sm:$0xf]  ;;  %v133_v31 = vld [vmem:[%s684_s3 + $0x30] sm:$0xff]  ;;  %v134_v32 = vld [vmem:[%s684_s3 + $0x38] sm:$0xff] }
   0x8   :  { %434 = vmatpush3.bf16.msra.mxu0 %v433_v7  ;;  %v27_v30 = vld [vmem:[%s681_s0] sm:$0xff]  ;;  %v457_v33 = vpack.c.bf16 %v134_v32, %v133_v31  ;;  %v218_v36 = vld [vmem:[%s686_s5 + $0x8] sm:$0xff]  ;;  %v219_v42 = vld [vmem:[%s686_s5 + $0x10] sm:$0xff] }
   0x9   :  { %435 = vmatprep.subr.bf16.mxu0 %v501_v2  ;;  %v323_v34 = vld [vmem:[%s683_s2] ss:$0 sm:$0xff]  ;;  %v220_v43 = vld [vmem:[%s686_s5 + $0x18] sm:$0xff]  ;;  %v222_v46 = vld [vmem:[%s686_s5 + $0x28] sm:$0xff] }
   0xa   :  { %452 = vmatpush3.bf16.msra.mxu1 %v451_v18  ;;  %v217_v35 = vld [vmem:[%s686_s5] sm:$0xff]  ;;  %v463_v44 = vpack.c.bf16 %v220_v43, %v219_v42  ;;  %v223_v48 = vld [vmem:[%s686_s5 + $0x30] sm:$0xff]  ;;  %v224_v49 = vld [vmem:[%s686_s5 + $0x38] sm:$0xff] }
   0xb   :  { %453 = vmatprep.subr.bf16.mxu1 %v501_v2  ;;  %v460_v40 = vpack.c.bf16 %v218_v36, %v217_v35  ;;  %v221_v45 = vld [vmem:[%s686_s5 + $0x20] sm:$0xff]  ;;  %v469_v50 = vpack.c.bf16 %v224_v49, %v223_v48 }
   0xc   :  { %437 = vmatpush3.bf16.msra.mxu0 %v436_v15  ;;  %v466_v47 = vpack.c.bf16 %v222_v46, %v221_v45  ;;  %v326_v51 = vld [vmem:[%s685_s4] ss:$0 sm:$0xff] }
   0xd   :  { %438 = vmatprep.subr.bf16.mxu0 %v501_v2  ;;  %v328_v56 = vld [vmem:[%s687_s6] ss:$0 sm:$0xff] }
   0xe   :  { %455 = vmatpush3.bf16.msra.mxu1 %v454_v24 }
   0xf   :  { %456 = vmatprep.subr.bf16.mxu1 %v501_v2 }
  0x10   :  { %440 = vmatpush3.bf16.msra.mxu0 %v439_v21 }
  0x11   :  { %441 = vmatprep.subr.bf16.mxu0 %v501_v2 }
  0x12   :  { %458 = vmatpush3.bf16.msra.mxu1 %v457_v33 }
  0x13   :  { %459 = vmatprep.subr.bf16.mxu1 %v501_v2 }
  0x14   :  { %443 = vmatpush3.bf16.msra.mxu0 %v442_v25 }
  0x15   :  { %444 = vmatprep.subr.bf16.mxu0 %v501_v2 }
  0x18   :  { %446 = vmatpush3.bf16.msra.mxu0 %v445_v28 }
  0x19   :  { %386 = vmatprep.subr.mxu0 %v503_v6 }
  0x1c   :  { %387 = vmatpush3.msk.msra.mxu0 %vm52_vm1, %v40_v29 }
  0x1d   :  { %389 = vmatmul.mubr.msk.f32.vlgmr.msra.gmra.mrb[0].mxu0 %vm48_vm2, %v27_v30 }
  0xf0   :  { %v122_v37 = vpop.f32.mrb[0].mxu0 }
  0xf1   :  { %v123_v38 = vadd.f32 %v323_v34, %v122_v37  ;;  %v390_v39 = vpop.f32.mrb[1].mxu0 }
  0xf3   :  { %v126_v41 = vmax.f32 %v123_v38, 0.0 }
  0xf5   :  { %408 = vmatmul.mubr.msk.f32.vlgmr.msra.gmra.mrb[0].mxu1 %vm142_vm3, %v126_v41 }
  0xf6   :  { %461 = vmatpush3.bf16.msra.mxu1 %v460_v40  ;;  %426 = vmatprep.mubr.msk.f32.mxu1 %vm502_vm0, %v503_v6 }
  0xf7   :  { %462 = vmatprep.subr.bf16.mxu1 %v501_v2 }
  0xfa   :  { %464 = vmatpush3.bf16.msra.mxu1 %v463_v44 }
  0xfb   :  { %465 = vmatprep.subr.bf16.mxu1 %v501_v2 }
  0xfe   :  { %467 = vmatpush3.bf16.msra.mxu1 %v466_v47 }
  0xff   :  { %468 = vmatprep.subr.bf16.mxu1 %v501_v2 }
 0x102   :  { %470 = vmatpush3.bf16.msra.mxu1 %v469_v50 }
 0x1c8   :  { %v212_v52 = vpop.f32.mrb[0].mxu1 }
 0x1c9   :  { %v213_v53 = vadd.f32 %v326_v51, %v212_v52  ;;  %v409_v54 = vpop.f32.mrb[1].mxu1 }
 0x1cb   :  { %v216_v55 = vmax.f32 %v213_v53, 0.0 }
 0x1cd   :  { %427 = vmatmul.mubr.msk.f32.vlgmr.msra.gmra.mrb[2].mxu1 %vm142_vm3, %v216_v55 }
 0x2a0   :  { %v301_v57 = vpop.f32.mrb[2].mxu1 }
 0x2a1   :  { %v302_v58 = vadd.f32 %v328_v56, %v301_v57  ;;  %v428_v59 = vpop.f32.mrb[3].mxu1 }
 0x2a3   :  { %306 = vst.msk [vmem:[#allocation2] sm:$0xff] %vm305_vm4, %v302_v58 }
 0x2a4   :  { %311 = vsyncadd [#allocation3], 96  ;;  %s504_s5 = smov [#allocation2]  }
 0x2a5   :  { %s312_s17 = sshll.u32 %s504_s5, 4  ;;  %s313_s17 = int_to_ptr.vmem [resolvable:$true] %s312_s17 }
 0x2a6   :  { %s477_s4 = scalar_lea.vmem %s313_s17, 32  ;;  %s481_s18 = scalar_lea.vmem %s313_s17, 128 }
 0x2a7   :  { %p478_p0 = scmp.ne.s32.totalorder %s313_s17, %s477_s4  ;;  %p482_p1 = scmp.lt.s32.totalorder %s313_s17, %s313_s17 }
 0x2a8   :  { %p483_p2 = scmp.lt.s32.totalorder %s481_s18, %s477_s4 }
 0x2aa   :  { %p484_p3 = por %p483_p2, %p482_p1 }
 0x2ac   :  { %p485_p4 = pnand %p484_p3, %p478_p0 }
 0x2ae   :  { %488 = shalt.err (!%p485_p4)
}
 0x2af   :  { %s489_s6 = scalar_lea.hbm %s688_s7, 32 }
 0x2b0   :  { %p490_p5 = scmp.ne.s32.totalorder %s688_s7, %s489_s6  ;;  %p493_p6 = scmp.lt.u32.totalorder %s489_s6, %s688_s7 }
 0x2b2   :  { %p495_p7 = pnand %p493_p6, %p490_p5 }
 0x2b4   :  { %498 = shalt.err (!%p495_p7)
}
 0x2b5   :  { %s505_s23 = smov 32   ;;  %s506_s24 = smov 2  }
 0x2b6   :  { %318 = dma.vmem_to_hbm [thread:$0]  %s313_s17, 32, %s688_s7, [#allocation3], %s505_s23, %s505_s23, %s506_s24  }
 0x2b7   :  { %499 = dma.done.wait [#allocation3], 128  }
 0x2b8   :  { %500 = vsyncadd [#allocation3], 4294967168 }
 0x2b9   :  { %322 = vsyncpa [#allocation3], 1 }

</bundles_post_ra>
